<compile_context>
chip_gen: v5e
topology: v5e:2x2
jax: 0.10.0
libtpu: 0.0.40
codegen_flags: <defaults>
</compile_context>

<pallas_src>
import jax
import jax.numpy as jnp
from jax.experimental import pallas as pl
from jax.experimental.pallas import tpu as pltpu


def double_conv_forward(x, w1, scale1, bias1, w2, scale2, bias2):
    """x: (N, Cin, H, W); w1: (Cout, Cin, 3, 3); w2: (Cout, Cout, 3, 3);
    scale*/bias*: (Cout,) folded BatchNorm affine. Returns (N, Cout, H, W)."""
    N, Cin, H, W = x.shape
    Cout = w1.shape[0]
    HW = H * W

    # Flattened-spatial layout: channels on sublanes, H*W on lanes.
    x_flat = x.reshape(N, Cin, HW).astype(jnp.float32)

    # Taps-major weights: w_t[k, co, ci] = w[co, ci, kh, kw], k = kh*3 + kw.
    w1_t = jnp.transpose(w1, (2, 3, 0, 1)).reshape(9, Cout, Cin).astype(jnp.float32)
    w2_t = jnp.transpose(w2, (2, 3, 0, 1)).reshape(9, Cout, Cout).astype(jnp.float32)

    s1 = scale1.reshape(Cout, 1).astype(jnp.float32)
    b1 = bias1.reshape(Cout, 1).astype(jnp.float32)
    s2 = scale2.reshape(Cout, 1).astype(jnp.float32)
    b2 = bias2.reshape(Cout, 1).astype(jnp.float32)

    # Per-tap validity masks over the flattened (H, W) grid: tap (kh, kw)
    # reads input pixel (h + kh - 1, w + kw - 1); mask is 0 where that pixel
    # falls off the image (replaces explicit zero-padding).
    hh = jnp.arange(H).reshape(H, 1)
    ww = jnp.arange(W).reshape(1, W)
    mask_list = []
    for kh in range(3):
        for kw in range(3):
            dh, dw = kh - 1, kw - 1
            m = ((hh + dh >= 0) & (hh + dh < H) &
                 (ww + dw >= 0) & (ww + dw < W))
            mask_list.append(m.reshape(1, 1, HW))
    masks = jnp.concatenate(mask_list, axis=0).astype(jnp.float32)   # (9, 1, HW)

    def kernel(x_ref, m_ref, w1_ref, s1_ref, b1_ref, w2_ref, s2_ref, b2_ref,
               o_ref):
        # x_ref : (1, Cin, HW)      one image, flattened spatial on lanes
        # m_ref : (9, 1, HW)        per-tap 0/1 edge-validity masks
        # w1_ref: (9, Cout, Cin)    conv1 weights, taps-major
        # s1/b1 : (Cout, 1)         BN1 folded scale / bias
        # w2_ref: (9, Cout, Cout)   conv2 weights, taps-major
        # s2/b2 : (Cout, 1)         BN2 folded scale / bias
        # o_ref : (1, Cout, HW)
        x_img = x_ref[0]                                    # (Cin, HW)

        def conv3x3(src, w_ref):
            # 3x3 conv (pad=1) as 9 tap-shifted matmuls on the MXU.
            cout = w_ref.shape[1]
            acc = jnp.zeros((cout, HW), jnp.float32)
            for k in range(9):
                kh, kw = k // 3, k % 3
                off = (kh - 1) * W + (kw - 1)               # flattened tap offset
                if off == 0:                                # center tap: no shift
                    shifted = src
                else:
                    # shifted[p] = src[p + off]; wrapped lanes are killed by mask.
                    shifted = pltpu.roll(src, shift=(-off) % HW, axis=1)
                    shifted = shifted * m_ref[k]            # (C, HW) * (1, HW)
                acc = acc + jnp.dot(w_ref[k], shifted,
                                    preferred_element_type=jnp.float32)
            return acc

        h1 = jnp.maximum(conv3x3(x_img, w1_ref) * s1_ref[...] + b1_ref[...], 0.0)
        out = jnp.maximum(conv3x3(h1, w2_ref) * s2_ref[...] + b2_ref[...], 0.0)
        o_ref[0] = out.astype(o_ref.dtype)

    out_flat = pl.pallas_call(
        kernel,
        out_shape=jax.ShapeDtypeStruct((N, Cout, HW), x.dtype),
        grid_spec=pltpu.PrefetchScalarGridSpec(
            num_scalar_prefetch=0,
            grid=(N,),
            in_specs=[
                pl.BlockSpec((1, Cin, HW), lambda n: (n, 0, 0)),     # x (per image)
                pl.BlockSpec((9, 1, HW), lambda n: (0, 0, 0)),       # tap masks (shared)
                pl.BlockSpec((9, Cout, Cin), lambda n: (0, 0, 0)),   # w1 (shared)
                pl.BlockSpec((Cout, 1), lambda n: (0, 0)),           # BN1 scale
                pl.BlockSpec((Cout, 1), lambda n: (0, 0)),           # BN1 bias
                pl.BlockSpec((9, Cout, Cout), lambda n: (0, 0, 0)),  # w2 (shared)
                pl.BlockSpec((Cout, 1), lambda n: (0, 0)),           # BN2 scale
                pl.BlockSpec((Cout, 1), lambda n: (0, 0)),           # BN2 bias
            ],
            out_specs=pl.BlockSpec((1, Cout, HW), lambda n: (n, 0, 0)),
        ),
        compiler_params=pltpu.CompilerParams(
            dimension_semantics=("parallel",),
            vmem_limit_bytes=32 * 1024 * 1024,
        ),
    )(x_flat, masks, w1_t, s1, b1, w2_t, s2, b2)

    return out_flat.reshape(N, Cout, H, W)


def double_conv_reference(x, w1, scale1, bias1, w2, scale2, bias2):
    """Pure-JAX reference mirroring the PyTorch forward (eval-mode BN folded)."""
    dn = ('NCHW', 'OIHW', 'NCHW')
    y = jax.lax.conv_general_dilated(x, w1, (1, 1), ((1, 1), (1, 1)),
                                     dimension_numbers=dn)
    y = jnp.maximum(y * scale1.reshape(1, -1, 1, 1) + bias1.reshape(1, -1, 1, 1), 0.0)
    y = jax.lax.conv_general_dilated(y, w2, (1, 1), ((1, 1), (1, 1)),
                                     dimension_numbers=dn)
    y = jnp.maximum(y * scale2.reshape(1, -1, 1, 1) + bias2.reshape(1, -1, 1, 1), 0.0)
    return y


if __name__ == "__main__":
    # Small shapes consistent with the module: DoubleConv(4, 8) on (2, 4, 16, 16).
    N, Cin, Cout, H, W = 2, 4, 8, 16, 16
    eps = 1e-5

    key = jax.random.PRNGKey(0)
    ks = jax.random.split(key, 11)

    x = jax.random.normal(ks[0], (N, Cin, H, W), dtype=jnp.float32)

    w1 = 0.1 * jax.random.normal(ks[1], (Cout, Cin, 3, 3), dtype=jnp.float32)
    gamma1 = 1.0 + 0.1 * jax.random.normal(ks[2], (Cout,), dtype=jnp.float32)
    beta1 = 0.1 * jax.random.normal(ks[3], (Cout,), dtype=jnp.float32)
    mean1 = 0.1 * jax.random.normal(ks[4], (Cout,), dtype=jnp.float32)
    var1 = 0.9 + 0.2 * jax.random.uniform(ks[5], (Cout,), dtype=jnp.float32)

    w2 = 0.1 * jax.random.normal(ks[6], (Cout, Cout, 3, 3), dtype=jnp.float32)
    gamma2 = 1.0 + 0.1 * jax.random.normal(ks[7], (Cout,), dtype=jnp.float32)
    beta2 = 0.1 * jax.random.normal(ks[8], (Cout,), dtype=jnp.float32)
    mean2 = 0.1 * jax.random.normal(ks[9], (Cout,), dtype=jnp.float32)
    var2 = 0.9 + 0.2 * jax.random.uniform(ks[10], (Cout,), dtype=jnp.float32)

    # Fold inference-mode BatchNorm into per-channel scale / bias.
    scale1 = gamma1 / jnp.sqrt(var1 + eps)
    bias1 = beta1 - mean1 * scale1
    scale2 = gamma2 / jnp.sqrt(var2 + eps)
    bias2 = beta2 - mean2 * scale2

    out = double_conv_forward(x, w1, scale1, bias1, w2, scale2, bias2)
    out = jax.block_until_ready(out)

    ref = double_conv_reference(x, w1, scale1, bias1, w2, scale2, bias2)
    assert out.shape == (N, Cout, H, W), out.shape
    assert jnp.allclose(out, ref, atol=1e-3, rtol=1e-3), \
        float(jnp.max(jnp.abs(out - ref)))

    print("KERNEL_OK")
</pallas_src>

<mosaic_0001>
module attributes {stable_mosaic.version = 11 : i64} {
  func.func @kernel(%arg0: i32, %arg1: memref<1x4x256xf32, #tpu.memory_space<vmem>>, %arg2: memref<9x1x256xf32, #tpu.memory_space<vmem>>, %arg3: memref<9x8x4xf32, #tpu.memory_space<vmem>>, %arg4: memref<8x1xf32, #tpu.memory_space<vmem>>, %arg5: memref<8x1xf32, #tpu.memory_space<vmem>>, %arg6: memref<9x8x8xf32, #tpu.memory_space<vmem>>, %arg7: memref<8x1xf32, #tpu.memory_space<vmem>>, %arg8: memref<8x1xf32, #tpu.memory_space<vmem>>, %arg9: memref<1x8x256xf32, #tpu.memory_space<vmem>>) attributes {dimension_semantics = [#tpu.dimension_semantics<parallel>], iteration_bounds = array<i64: 2>, scalar_prefetch = 0 : i64, scratch_operands = 0 : i64, tpu.core_type = #tpu.core_type<tc>, window_params = [{transform_indices = @transform_0, window_bounds = array<i64: 1, 4, 256>}, {pipeline_mode = #tpu.pipeline_mode<synchronous>, transform_indices = @transform_1, window_bounds = array<i64: 9, 1, 256>}, {pipeline_mode = #tpu.pipeline_mode<synchronous>, transform_indices = @transform_2, window_bounds = array<i64: 9, 8, 4>}, {pipeline_mode = #tpu.pipeline_mode<synchronous>, transform_indices = @transform_3, window_bounds = array<i64: 8, 1>}, {pipeline_mode = #tpu.pipeline_mode<synchronous>, transform_indices = @transform_4, window_bounds = array<i64: 8, 1>}, {pipeline_mode = #tpu.pipeline_mode<synchronous>, transform_indices = @transform_5, window_bounds = array<i64: 9, 8, 8>}, {pipeline_mode = #tpu.pipeline_mode<synchronous>, transform_indices = @transform_6, window_bounds = array<i64: 8, 1>}, {pipeline_mode = #tpu.pipeline_mode<synchronous>, transform_indices = @transform_7, window_bounds = array<i64: 8, 1>}, {transform_indices = @transform_8, window_bounds = array<i64: 1, 8, 256>}]} {
    %c0 = arith.constant 0 : index
    %c0_0 = arith.constant 0 : index
    %c0_1 = arith.constant 0 : index
    %0 = vector.load %arg1[%c0, %c0_0, %c0_1] : memref<1x4x256xf32, #tpu.memory_space<vmem>>, vector<1x4x256xf32>
    %1 = vector.shape_cast %0 : vector<1x4x256xf32> to vector<4x256xf32>
    %cst = arith.constant 0.000000e+00 : f32
    %2 = vector.broadcast %cst : f32 to vector<8x256xf32>
    %c17_i32 = arith.constant 17 : i32
    %3 = tpu.dynamic_rotate %1 by %c17_i32 dim 1 : vector<4x256xf32>, i32 -> vector<4x256xf32>
    %c0_2 = arith.constant 0 : index
    %c0_3 = arith.constant 0 : index
    %c0_4 = arith.constant 0 : index
    %4 = vector.load %arg2[%c0_2, %c0_3, %c0_4] : memref<9x1x256xf32, #tpu.memory_space<vmem>>, vector<1x1x256xf32>
    %5 = vector.shape_cast %4 : vector<1x1x256xf32> to vector<1x256xf32>
    %6 = vector.broadcast %5 : vector<1x256xf32> to vector<4x256xf32>
    %7 = arith.mulf %3, %6 : vector<4x256xf32>
    %c0_5 = arith.constant 0 : index
    %c0_6 = arith.constant 0 : index
    %c0_7 = arith.constant 0 : index
    %8 = vector.load %arg3[%c0_5, %c0_6, %c0_7] : memref<9x8x4xf32, #tpu.memory_space<vmem>>, vector<1x8x4xf32>
    %9 = vector.shape_cast %8 : vector<1x8x4xf32> to vector<8x4xf32>
    %cst_8 = arith.constant dense<0.000000e+00> : vector<8x256xf32>
    %10 = tpu.matmul %9, %7, %cst_8 {dimension_numbers = #tpu.dot_dimension_numbers<[1], [0], [0], [1], [0, 0, 1, 1], [], []>} : vector<8x4xf32>, vector<4x256xf32>, vector<8x256xf32> -> vector<8x256xf32>
    %11 = arith.addf %2, %10 : vector<8x256xf32>
    %c16_i32 = arith.constant 16 : i32
    %12 = tpu.dynamic_rotate %1 by %c16_i32 dim 1 : vector<4x256xf32>, i32 -> vector<4x256xf32>
    %c1 = arith.constant 1 : index
    %c0_9 = arith.constant 0 : index
    %c0_10 = arith.constant 0 : index
    %13 = vector.load %arg2[%c1, %c0_9, %c0_10] : memref<9x1x256xf32, #tpu.memory_space<vmem>>, vector<1x1x256xf32>
    %14 = vector.shape_cast %13 : vector<1x1x256xf32> to vector<1x256xf32>
    %15 = vector.broadcast %14 : vector<1x256xf32> to vector<4x256xf32>
    %16 = arith.mulf %12, %15 : vector<4x256xf32>
    %c1_11 = arith.constant 1 : index
    %c0_12 = arith.constant 0 : index
    %c0_13 = arith.constant 0 : index
    %17 = vector.load %arg3[%c1_11, %c0_12, %c0_13] : memref<9x8x4xf32, #tpu.memory_space<vmem>>, vector<1x8x4xf32>
    %18 = vector.shape_cast %17 : vector<1x8x4xf32> to vector<8x4xf32>
    %cst_14 = arith.constant dense<0.000000e+00> : vector<8x256xf32>
    %19 = tpu.matmul %18, %16, %cst_14 {dimension_numbers = #tpu.dot_dimension_numbers<[1], [0], [0], [1], [0, 0, 1, 1], [], []>} : vector<8x4xf32>, vector<4x256xf32>, vector<8x256xf32> -> vector<8x256xf32>
    %20 = arith.addf %11, %19 : vector<8x256xf32>
    %c15_i32 = arith.constant 15 : i32
    %21 = tpu.dynamic_rotate %1 by %c15_i32 dim 1 : vector<4x256xf32>, i32 -> vector<4x256xf32>
    %c2 = arith.constant 2 : index
    %c0_15 = arith.constant 0 : index
    %c0_16 = arith.constant 0 : index
    %22 = vector.load %arg2[%c2, %c0_15, %c0_16] : memref<9x1x256xf32, #tpu.memory_space<vmem>>, vector<1x1x256xf32>
    %23 = vector.shape_cast %22 : vector<1x1x256xf32> to vector<1x256xf32>
    %24 = vector.broadcast %23 : vector<1x256xf32> to vector<4x256xf32>
    %25 = arith.mulf %21, %24 : vector<4x256xf32>
    %c2_17 = arith.constant 2 : index
    %c0_18 = arith.constant 0 : index
    %c0_19 = arith.constant 0 : index
    %26 = vector.load %arg3[%c2_17, %c0_18, %c0_19] : memref<9x8x4xf32, #tpu.memory_space<vmem>>, vector<1x8x4xf32>
    %27 = vector.shape_cast %26 : vector<1x8x4xf32> to vector<8x4xf32>
    %cst_20 = arith.constant dense<0.000000e+00> : vector<8x256xf32>
    %28 = tpu.matmul %27, %25, %cst_20 {dimension_numbers = #tpu.dot_dimension_numbers<[1], [0], [0], [1], [0, 0, 1, 1], [], []>} : vector<8x4xf32>, vector<4x256xf32>, vector<8x256xf32> -> vector<8x256xf32>
    %29 = arith.addf %20, %28 : vector<8x256xf32>
    %c1_i32 = arith.constant 1 : i32
    %30 = tpu.dynamic_rotate %1 by %c1_i32 dim 1 : vector<4x256xf32>, i32 -> vector<4x256xf32>
    %c3 = arith.constant 3 : index
    %c0_21 = arith.constant 0 : index
    %c0_22 = arith.constant 0 : index
    %31 = vector.load %arg2[%c3, %c0_21, %c0_22] : memref<9x1x256xf32, #tpu.memory_space<vmem>>, vector<1x1x256xf32>
    %32 = vector.shape_cast %31 : vector<1x1x256xf32> to vector<1x256xf32>
    %33 = vector.broadcast %32 : vector<1x256xf32> to vector<4x256xf32>
    %34 = arith.mulf %30, %33 : vector<4x256xf32>
    %c3_23 = arith.constant 3 : index
    %c0_24 = arith.constant 0 : index
    %c0_25 = arith.constant 0 : index
    %35 = vector.load %arg3[%c3_23, %c0_24, %c0_25] : memref<9x8x4xf32, #tpu.memory_space<vmem>>, vector<1x8x4xf32>
    %36 = vector.shape_cast %35 : vector<1x8x4xf32> to vector<8x4xf32>
    %cst_26 = arith.constant dense<0.000000e+00> : vector<8x256xf32>
    %37 = tpu.matmul %36, %34, %cst_26 {dimension_numbers = #tpu.dot_dimension_numbers<[1], [0], [0], [1], [0, 0, 1, 1], [], []>} : vector<8x4xf32>, vector<4x256xf32>, vector<8x256xf32> -> vector<8x256xf32>
    %38 = arith.addf %29, %37 : vector<8x256xf32>
    %c4 = arith.constant 4 : index
    %c0_27 = arith.constant 0 : index
    %c0_28 = arith.constant 0 : index
    %39 = vector.load %arg3[%c4, %c0_27, %c0_28] : memref<9x8x4xf32, #tpu.memory_space<vmem>>, vector<1x8x4xf32>
    %40 = vector.shape_cast %39 : vector<1x8x4xf32> to vector<8x4xf32>
    %cst_29 = arith.constant dense<0.000000e+00> : vector<8x256xf32>
    %41 = tpu.matmul %40, %1, %cst_29 {dimension_numbers = #tpu.dot_dimension_numbers<[1], [0], [0], [1], [0, 0, 1, 1], [], []>} : vector<8x4xf32>, vector<4x256xf32>, vector<8x256xf32> -> vector<8x256xf32>
    %42 = arith.addf %38, %41 : vector<8x256xf32>
    %c255_i32 = arith.constant 255 : i32
    %43 = tpu.dynamic_rotate %1 by %c255_i32 dim 1 : vector<4x256xf32>, i32 -> vector<4x256xf32>
    %c5 = arith.constant 5 : index
    %c0_30 = arith.constant 0 : index
    %c0_31 = arith.constant 0 : index
    %44 = vector.load %arg2[%c5, %c0_30, %c0_31] : memref<9x1x256xf32, #tpu.memory_space<vmem>>, vector<1x1x256xf32>
    %45 = vector.shape_cast %44 : vector<1x1x256xf32> to vector<1x256xf32>
    %46 = vector.broadcast %45 : vector<1x256xf32> to vector<4x256xf32>
    %47 = arith.mulf %43, %46 : vector<4x256xf32>
    %c5_32 = arith.constant 5 : index
    %c0_33 = arith.constant 0 : index
    %c0_34 = arith.constant 0 : index
    %48 = vector.load %arg3[%c5_32, %c0_33, %c0_34] : memref<9x8x4xf32, #tpu.memory_space<vmem>>, vector<1x8x4xf32>
    %49 = vector.shape_cast %48 : vector<1x8x4xf32> to vector<8x4xf32>
    %cst_35 = arith.constant dense<0.000000e+00> : vector<8x256xf32>
    %50 = tpu.matmul %49, %47, %cst_35 {dimension_numbers = #tpu.dot_dimension_numbers<[1], [0], [0], [1], [0, 0, 1, 1], [], []>} : vector<8x4xf32>, vector<4x256xf32>, vector<8x256xf32> -> vector<8x256xf32>
    %51 = arith.addf %42, %50 : vector<8x256xf32>
    %c241_i32 = arith.constant 241 : i32
    %52 = tpu.dynamic_rotate %1 by %c241_i32 dim 1 : vector<4x256xf32>, i32 -> vector<4x256xf32>
    %c6 = arith.constant 6 : index
    %c0_36 = arith.constant 0 : index
    %c0_37 = arith.constant 0 : index
    %53 = vector.load %arg2[%c6, %c0_36, %c0_37] : memref<9x1x256xf32, #tpu.memory_space<vmem>>, vector<1x1x256xf32>
    %54 = vector.shape_cast %53 : vector<1x1x256xf32> to vector<1x256xf32>
    %55 = vector.broadcast %54 : vector<1x256xf32> to vector<4x256xf32>
    %56 = arith.mulf %52, %55 : vector<4x256xf32>
    %c6_38 = arith.constant 6 : index
    %c0_39 = arith.constant 0 : index
    %c0_40 = arith.constant 0 : index
    %57 = vector.load %arg3[%c6_38, %c0_39, %c0_40] : memref<9x8x4xf32, #tpu.memory_space<vmem>>, vector<1x8x4xf32>
    %58 = vector.shape_cast %57 : vector<1x8x4xf32> to vector<8x4xf32>
    %cst_41 = arith.constant dense<0.000000e+00> : vector<8x256xf32>
    %59 = tpu.matmul %58, %56, %cst_41 {dimension_numbers = #tpu.dot_dimension_numbers<[1], [0], [0], [1], [0, 0, 1, 1], [], []>} : vector<8x4xf32>, vector<4x256xf32>, vector<8x256xf32> -> vector<8x256xf32>
    %60 = arith.addf %51, %59 : vector<8x256xf32>
    %c240_i32 = arith.constant 240 : i32
    %61 = tpu.dynamic_rotate %1 by %c240_i32 dim 1 : vector<4x256xf32>, i32 -> vector<4x256xf32>
    %c7 = arith.constant 7 : index
    %c0_42 = arith.constant 0 : index
    %c0_43 = arith.constant 0 : index
    %62 = vector.load %arg2[%c7, %c0_42, %c0_43] : memref<9x1x256xf32, #tpu.memory_space<vmem>>, vector<1x1x256xf32>
    %63 = vector.shape_cast %62 : vector<1x1x256xf32> to vector<1x256xf32>
    %64 = vector.broadcast %63 : vector<1x256xf32> to vector<4x256xf32>
    %65 = arith.mulf %61, %64 : vector<4x256xf32>
    %c7_44 = arith.constant 7 : index
    %c0_45 = arith.constant 0 : index
    %c0_46 = arith.constant 0 : index
    %66 = vector.load %arg3[%c7_44, %c0_45, %c0_46] : memref<9x8x4xf32, #tpu.memory_space<vmem>>, vector<1x8x4xf32>
    %67 = vector.shape_cast %66 : vector<1x8x4xf32> to vector<8x4xf32>
    %cst_47 = arith.constant dense<0.000000e+00> : vector<8x256xf32>
    %68 = tpu.matmul %67, %65, %cst_47 {dimension_numbers = #tpu.dot_dimension_numbers<[1], [0], [0], [1], [0, 0, 1, 1], [], []>} : vector<8x4xf32>, vector<4x256xf32>, vector<8x256xf32> -> vector<8x256xf32>
    %69 = arith.addf %60, %68 : vector<8x256xf32>
    %c239_i32 = arith.constant 239 : i32
    %70 = tpu.dynamic_rotate %1 by %c239_i32 dim 1 : vector<4x256xf32>, i32 -> vector<4x256xf32>
    %c8 = arith.constant 8 : index
    %c0_48 = arith.constant 0 : index
    %c0_49 = arith.constant 0 : index
    %71 = vector.load %arg2[%c8, %c0_48, %c0_49] : memref<9x1x256xf32, #tpu.memory_space<vmem>>, vector<1x1x256xf32>
    %72 = vector.shape_cast %71 : vector<1x1x256xf32> to vector<1x256xf32>
    %73 = vector.broadcast %72 : vector<1x256xf32> to vector<4x256xf32>
    %74 = arith.mulf %70, %73 : vector<4x256xf32>
    %c8_50 = arith.constant 8 : index
    %c0_51 = arith.constant 0 : index
    %c0_52 = arith.constant 0 : index
    %75 = vector.load %arg3[%c8_50, %c0_51, %c0_52] : memref<9x8x4xf32, #tpu.memory_space<vmem>>, vector<1x8x4xf32>
    %76 = vector.shape_cast %75 : vector<1x8x4xf32> to vector<8x4xf32>
    %cst_53 = arith.constant dense<0.000000e+00> : vector<8x256xf32>
    %77 = tpu.matmul %76, %74, %cst_53 {dimension_numbers = #tpu.dot_dimension_numbers<[1], [0], [0], [1], [0, 0, 1, 1], [], []>} : vector<8x4xf32>, vector<4x256xf32>, vector<8x256xf32> -> vector<8x256xf32>
    %78 = arith.addf %69, %77 : vector<8x256xf32>
    %c0_54 = arith.constant 0 : index
    %c0_55 = arith.constant 0 : index
    %79 = vector.load %arg4[%c0_54, %c0_55] : memref<8x1xf32, #tpu.memory_space<vmem>>, vector<8x1xf32>
    %80 = vector.broadcast %79 : vector<8x1xf32> to vector<8x256xf32>
    %81 = arith.mulf %78, %80 : vector<8x256xf32>
    %c0_56 = arith.constant 0 : index
    %c0_57 = arith.constant 0 : index
    %82 = vector.load %arg5[%c0_56, %c0_57] : memref<8x1xf32, #tpu.memory_space<vmem>>, vector<8x1xf32>
    %83 = vector.broadcast %82 : vector<8x1xf32> to vector<8x256xf32>
    %84 = arith.addf %81, %83 : vector<8x256xf32>
    %cst_58 = arith.constant 0.000000e+00 : f32
    %85 = vector.broadcast %cst_58 : f32 to vector<8x256xf32>
    %86 = arith.maximumf %84, %85 : vector<8x256xf32>
    %cst_59 = arith.constant 0.000000e+00 : f32
    %87 = vector.broadcast %cst_59 : f32 to vector<8x256xf32>
    %c17_i32_60 = arith.constant 17 : i32
    %88 = tpu.dynamic_rotate %86 by %c17_i32_60 dim 1 : vector<8x256xf32>, i32 -> vector<8x256xf32>
    %c0_61 = arith.constant 0 : index
    %c0_62 = arith.constant 0 : index
    %c0_63 = arith.constant 0 : index
    %89 = vector.load %arg2[%c0_61, %c0_62, %c0_63] : memref<9x1x256xf32, #tpu.memory_space<vmem>>, vector<1x1x256xf32>
    %90 = vector.shape_cast %89 : vector<1x1x256xf32> to vector<1x256xf32>
    %91 = vector.broadcast %90 : vector<1x256xf32> to vector<8x256xf32>
    %92 = arith.mulf %88, %91 : vector<8x256xf32>
    %c0_64 = arith.constant 0 : index
    %c0_65 = arith.constant 0 : index
    %c0_66 = arith.constant 0 : index
    %93 = vector.load %arg6[%c0_64, %c0_65, %c0_66] : memref<9x8x8xf32, #tpu.memory_space<vmem>>, vector<1x8x8xf32>
    %94 = vector.shape_cast %93 : vector<1x8x8xf32> to vector<8x8xf32>
    %cst_67 = arith.constant dense<0.000000e+00> : vector<8x256xf32>
    %95 = tpu.matmul %94, %92, %cst_67 {dimension_numbers = #tpu.dot_dimension_numbers<[1], [0], [0], [1], [0, 0, 1, 1], [], []>} : vector<8x8xf32>, vector<8x256xf32>, vector<8x256xf32> -> vector<8x256xf32>
    %96 = arith.addf %87, %95 : vector<8x256xf32>
    %c16_i32_68 = arith.constant 16 : i32
    %97 = tpu.dynamic_rotate %86 by %c16_i32_68 dim 1 : vector<8x256xf32>, i32 -> vector<8x256xf32>
    %c1_69 = arith.constant 1 : index
    %c0_70 = arith.constant 0 : index
    %c0_71 = arith.constant 0 : index
    %98 = vector.load %arg2[%c1_69, %c0_70, %c0_71] : memref<9x1x256xf32, #tpu.memory_space<vmem>>, vector<1x1x256xf32>
    %99 = vector.shape_cast %98 : vector<1x1x256xf32> to vector<1x256xf32>
    %100 = vector.broadcast %99 : vector<1x256xf32> to vector<8x256xf32>
    %101 = arith.mulf %97, %100 : vector<8x256xf32>
    %c1_72 = arith.constant 1 : index
    %c0_73 = arith.constant 0 : index
    %c0_74 = arith.constant 0 : index
    %102 = vector.load %arg6[%c1_72, %c0_73, %c0_74] : memref<9x8x8xf32, #tpu.memory_space<vmem>>, vector<1x8x8xf32>
    %103 = vector.shape_cast %102 : vector<1x8x8xf32> to vector<8x8xf32>
    %cst_75 = arith.constant dense<0.000000e+00> : vector<8x256xf32>
    %104 = tpu.matmul %103, %101, %cst_75 {dimension_numbers = #tpu.dot_dimension_numbers<[1], [0], [0], [1], [0, 0, 1, 1], [], []>} : vector<8x8xf32>, vector<8x256xf32>, vector<8x256xf32> -> vector<8x256xf32>
    %105 = arith.addf %96, %104 : vector<8x256xf32>
    %c15_i32_76 = arith.constant 15 : i32
    %106 = tpu.dynamic_rotate %86 by %c15_i32_76 dim 1 : vector<8x256xf32>, i32 -> vector<8x256xf32>
    %c2_77 = arith.constant 2 : index
    %c0_78 = arith.constant 0 : index
    %c0_79 = arith.constant 0 : index
    %107 = vector.load %arg2[%c2_77, %c0_78, %c0_79] : memref<9x1x256xf32, #tpu.memory_space<vmem>>, vector<1x1x256xf32>
    %108 = vector.shape_cast %107 : vector<1x1x256xf32> to vector<1x256xf32>
    %109 = vector.broadcast %108 : vector<1x256xf32> to vector<8x256xf32>
    %110 = arith.mulf %106, %109 : vector<8x256xf32>
    %c2_80 = arith.constant 2 : index
    %c0_81 = arith.constant 0 : index
    %c0_82 = arith.constant 0 : index
    %111 = vector.load %arg6[%c2_80, %c0_81, %c0_82] : memref<9x8x8xf32, #tpu.memory_space<vmem>>, vector<1x8x8xf32>
    %112 = vector.shape_cast %111 : vector<1x8x8xf32> to vector<8x8xf32>
    %cst_83 = arith.constant dense<0.000000e+00> : vector<8x256xf32>
    %113 = tpu.matmul %112, %110, %cst_83 {dimension_numbers = #tpu.dot_dimension_numbers<[1], [0], [0], [1], [0, 0, 1, 1], [], []>} : vector<8x8xf32>, vector<8x256xf32>, vector<8x256xf32> -> vector<8x256xf32>
    %114 = arith.addf %105, %113 : vector<8x256xf32>
    %c1_i32_84 = arith.constant 1 : i32
    %115 = tpu.dynamic_rotate %86 by %c1_i32_84 dim 1 : vector<8x256xf32>, i32 -> vector<8x256xf32>
    %c3_85 = arith.constant 3 : index
    %c0_86 = arith.constant 0 : index
    %c0_87 = arith.constant 0 : index
    %116 = vector.load %arg2[%c3_85, %c0_86, %c0_87] : memref<9x1x256xf32, #tpu.memory_space<vmem>>, vector<1x1x256xf32>
    %117 = vector.shape_cast %116 : vector<1x1x256xf32> to vector<1x256xf32>
    %118 = vector.broadcast %117 : vector<1x256xf32> to vector<8x256xf32>
    %119 = arith.mulf %115, %118 : vector<8x256xf32>
    %c3_88 = arith.constant 3 : index
    %c0_89 = arith.constant 0 : index
    %c0_90 = arith.constant 0 : index
    %120 = vector.load %arg6[%c3_88, %c0_89, %c0_90] : memref<9x8x8xf32, #tpu.memory_space<vmem>>, vector<1x8x8xf32>
    %121 = vector.shape_cast %120 : vector<1x8x8xf32> to vector<8x8xf32>
    %cst_91 = arith.constant dense<0.000000e+00> : vector<8x256xf32>
    %122 = tpu.matmul %121, %119, %cst_91 {dimension_numbers = #tpu.dot_dimension_numbers<[1], [0], [0], [1], [0, 0, 1, 1], [], []>} : vector<8x8xf32>, vector<8x256xf32>, vector<8x256xf32> -> vector<8x256xf32>
    %123 = arith.addf %114, %122 : vector<8x256xf32>
    %c4_92 = arith.constant 4 : index
    %c0_93 = arith.constant 0 : index
    %c0_94 = arith.constant 0 : index
    %124 = vector.load %arg6[%c4_92, %c0_93, %c0_94] : memref<9x8x8xf32, #tpu.memory_space<vmem>>, vector<1x8x8xf32>
    %125 = vector.shape_cast %124 : vector<1x8x8xf32> to vector<8x8xf32>
    %cst_95 = arith.constant dense<0.000000e+00> : vector<8x256xf32>
    %126 = tpu.matmul %125, %86, %cst_95 {dimension_numbers = #tpu.dot_dimension_numbers<[1], [0], [0], [1], [0, 0, 1, 1], [], []>} : vector<8x8xf32>, vector<8x256xf32>, vector<8x256xf32> -> vector<8x256xf32>
    %127 = arith.addf %123, %126 : vector<8x256xf32>
    %c255_i32_96 = arith.constant 255 : i32
    %128 = tpu.dynamic_rotate %86 by %c255_i32_96 dim 1 : vector<8x256xf32>, i32 -> vector<8x256xf32>
    %c5_97 = arith.constant 5 : index
    %c0_98 = arith.constant 0 : index
    %c0_99 = arith.constant 0 : index
    %129 = vector.load %arg2[%c5_97, %c0_98, %c0_99] : memref<9x1x256xf32, #tpu.memory_space<vmem>>, vector<1x1x256xf32>
    %130 = vector.shape_cast %129 : vector<1x1x256xf32> to vector<1x256xf32>
    %131 = vector.broadcast %130 : vector<1x256xf32> to vector<8x256xf32>
    %132 = arith.mulf %128, %131 : vector<8x256xf32>
    %c5_100 = arith.constant 5 : index
    %c0_101 = arith.constant 0 : index
    %c0_102 = arith.constant 0 : index
    %133 = vector.load %arg6[%c5_100, %c0_101, %c0_102] : memref<9x8x8xf32, #tpu.memory_space<vmem>>, vector<1x8x8xf32>
    %134 = vector.shape_cast %133 : vector<1x8x8xf32> to vector<8x8xf32>
    %cst_103 = arith.constant dense<0.000000e+00> : vector<8x256xf32>
    %135 = tpu.matmul %134, %132, %cst_103 {dimension_numbers = #tpu.dot_dimension_numbers<[1], [0], [0], [1], [0, 0, 1, 1], [], []>} : vector<8x8xf32>, vector<8x256xf32>, vector<8x256xf32> -> vector<8x256xf32>
    %136 = arith.addf %127, %135 : vector<8x256xf32>
    %c241_i32_104 = arith.constant 241 : i32
    %137 = tpu.dynamic_rotate %86 by %c241_i32_104 dim 1 : vector<8x256xf32>, i32 -> vector<8x256xf32>
    %c6_105 = arith.constant 6 : index
    %c0_106 = arith.constant 0 : index
    %c0_107 = arith.constant 0 : index
    %138 = vector.load %arg2[%c6_105, %c0_106, %c0_107] : memref<9x1x256xf32, #tpu.memory_space<vmem>>, vector<1x1x256xf32>
    %139 = vector.shape_cast %138 : vector<1x1x256xf32> to vector<1x256xf32>
    %140 = vector.broadcast %139 : vector<1x256xf32> to vector<8x256xf32>
    %141 = arith.mulf %137, %140 : vector<8x256xf32>
    %c6_108 = arith.constant 6 : index
    %c0_109 = arith.constant 0 : index
    %c0_110 = arith.constant 0 : index
    %142 = vector.load %arg6[%c6_108, %c0_109, %c0_110] : memref<9x8x8xf32, #tpu.memory_space<vmem>>, vector<1x8x8xf32>
    %143 = vector.shape_cast %142 : vector<1x8x8xf32> to vector<8x8xf32>
    %cst_111 = arith.constant dense<0.000000e+00> : vector<8x256xf32>
    %144 = tpu.matmul %143, %141, %cst_111 {dimension_numbers = #tpu.dot_dimension_numbers<[1], [0], [0], [1], [0, 0, 1, 1], [], []>} : vector<8x8xf32>, vector<8x256xf32>, vector<8x256xf32> -> vector<8x256xf32>
    %145 = arith.addf %136, %144 : vector<8x256xf32>
    %c240_i32_112 = arith.constant 240 : i32
    %146 = tpu.dynamic_rotate %86 by %c240_i32_112 dim 1 : vector<8x256xf32>, i32 -> vector<8x256xf32>
    %c7_113 = arith.constant 7 : index
    %c0_114 = arith.constant 0 : index
    %c0_115 = arith.constant 0 : index
    %147 = vector.load %arg2[%c7_113, %c0_114, %c0_115] : memref<9x1x256xf32, #tpu.memory_space<vmem>>, vector<1x1x256xf32>
    %148 = vector.shape_cast %147 : vector<1x1x256xf32> to vector<1x256xf32>
    %149 = vector.broadcast %148 : vector<1x256xf32> to vector<8x256xf32>
    %150 = arith.mulf %146, %149 : vector<8x256xf32>
    %c7_116 = arith.constant 7 : index
    %c0_117 = arith.constant 0 : index
    %c0_118 = arith.constant 0 : index
    %151 = vector.load %arg6[%c7_116, %c0_117, %c0_118] : memref<9x8x8xf32, #tpu.memory_space<vmem>>, vector<1x8x8xf32>
    %152 = vector.shape_cast %151 : vector<1x8x8xf32> to vector<8x8xf32>
    %cst_119 = arith.constant dense<0.000000e+00> : vector<8x256xf32>
    %153 = tpu.matmul %152, %150, %cst_119 {dimension_numbers = #tpu.dot_dimension_numbers<[1], [0], [0], [1], [0, 0, 1, 1], [], []>} : vector<8x8xf32>, vector<8x256xf32>, vector<8x256xf32> -> vector<8x256xf32>
    %154 = arith.addf %145, %153 : vector<8x256xf32>
    %c239_i32_120 = arith.constant 239 : i32
    %155 = tpu.dynamic_rotate %86 by %c239_i32_120 dim 1 : vector<8x256xf32>, i32 -> vector<8x256xf32>
    %c8_121 = arith.constant 8 : index
    %c0_122 = arith.constant 0 : index
    %c0_123 = arith.constant 0 : index
    %156 = vector.load %arg2[%c8_121, %c0_122, %c0_123] : memref<9x1x256xf32, #tpu.memory_space<vmem>>, vector<1x1x256xf32>
    %157 = vector.shape_cast %156 : vector<1x1x256xf32> to vector<1x256xf32>
    %158 = vector.broadcast %157 : vector<1x256xf32> to vector<8x256xf32>
    %159 = arith.mulf %155, %158 : vector<8x256xf32>
    %c8_124 = arith.constant 8 : index
    %c0_125 = arith.constant 0 : index
    %c0_126 = arith.constant 0 : index
    %160 = vector.load %arg6[%c8_124, %c0_125, %c0_126] : memref<9x8x8xf32, #tpu.memory_space<vmem>>, vector<1x8x8xf32>
    %161 = vector.shape_cast %160 : vector<1x8x8xf32> to vector<8x8xf32>
    %cst_127 = arith.constant dense<0.000000e+00> : vector<8x256xf32>
    %162 = tpu.matmul %161, %159, %cst_127 {dimension_numbers = #tpu.dot_dimension_numbers<[1], [0], [0], [1], [0, 0, 1, 1], [], []>} : vector<8x8xf32>, vector<8x256xf32>, vector<8x256xf32> -> vector<8x256xf32>
    %163 = arith.addf %154, %162 : vector<8x256xf32>
    %c0_128 = arith.constant 0 : index
    %c0_129 = arith.constant 0 : index
    %164 = vector.load %arg7[%c0_128, %c0_129] : memref<8x1xf32, #tpu.memory_space<vmem>>, vector<8x1xf32>
    %165 = vector.broadcast %164 : vector<8x1xf32> to vector<8x256xf32>
    %166 = arith.mulf %163, %165 : vector<8x256xf32>
    %c0_130 = arith.constant 0 : index
    %c0_131 = arith.constant 0 : index
    %167 = vector.load %arg8[%c0_130, %c0_131] : memref<8x1xf32, #tpu.memory_space<vmem>>, vector<8x1xf32>
    %168 = vector.broadcast %167 : vector<8x1xf32> to vector<8x256xf32>
    %169 = arith.addf %166, %168 : vector<8x256xf32>
    %cst_132 = arith.constant 0.000000e+00 : f32
    %170 = vector.broadcast %cst_132 : f32 to vector<8x256xf32>
    %171 = arith.maximumf %169, %170 : vector<8x256xf32>
    %c0_133 = arith.constant 0 : index
    %c0_134 = arith.constant 0 : index
    %c0_135 = arith.constant 0 : index
    %172 = vector.load %arg9[%c0_133, %c0_134, %c0_135] : memref<1x8x256xf32, #tpu.memory_space<vmem>>, vector<1x8x256xf32>
    %173 = vector.shape_cast %172 : vector<1x8x256xf32> to vector<8x256xf32>
    %174 = vector.shape_cast %171 : vector<8x256xf32> to vector<1x8x256xf32>
    tpu.vector_store %arg9[%c0_133, %c0_134, %c0_135], %174 {strides = array<i32>} : memref<1x8x256xf32, #tpu.memory_space<vmem>>, vector<1x8x256xf32>,
    return
  }
  func.func @transform_0(%arg0: i32) -> (i32, i32, i32) {
    %c0_i32 = arith.constant 0 : i32
    %c0_i32_0 = arith.constant 0 : i32
    %c0_i32_1 = arith.constant 0 : i32
    return %arg0, %c0_i32, %c0_i32_0 : i32, i32, i32
  }
  func.func @transform_1(%arg0: i32) -> (i32, i32, i32) {
    %c0_i32 = arith.constant 0 : i32
    %c0_i32_0 = arith.constant 0 : i32
    %c0_i32_1 = arith.constant 0 : i32
    %c0_i32_2 = arith.constant 0 : i32
    return %c0_i32, %c0_i32_0, %c0_i32_1 : i32, i32, i32
  }
  func.func @transform_2(%arg0: i32) -> (i32, i32, i32) {
    %c0_i32 = arith.constant 0 : i32
    %c0_i32_0 = arith.constant 0 : i32
    %c0_i32_1 = arith.constant 0 : i32
    %c0_i32_2 = arith.constant 0 : i32
    return %c0_i32, %c0_i32_0, %c0_i32_1 : i32, i32, i32
  }
  func.func @transform_3(%arg0: i32) -> (i32, i32) {
    %c0_i32 = arith.constant 0 : i32
    %c0_i32_0 = arith.constant 0 : i32
    %c0_i32_1 = arith.constant 0 : i32
    return %c0_i32, %c0_i32_0 : i32, i32
  }
  func.func @transform_4(%arg0: i32) -> (i32, i32) {
    %c0_i32 = arith.constant 0 : i32
    %c0_i32_0 = arith.constant 0 : i32
    %c0_i32_1 = arith.constant 0 : i32
    return %c0_i32, %c0_i32_0 : i32, i32
  }
  func.func @transform_5(%arg0: i32) -> (i32, i32, i32) {
    %c0_i32 = arith.constant 0 : i32
    %c0_i32_0 = arith.constant 0 : i32
    %c0_i32_1 = arith.constant 0 : i32
    %c0_i32_2 = arith.constant 0 : i32
    return %c0_i32, %c0_i32_0, %c0_i32_1 : i32, i32, i32
  }
  func.func @transform_6(%arg0: i32) -> (i32, i32) {
    %c0_i32 = arith.constant 0 : i32
    %c0_i32_0 = arith.constant 0 : i32
    %c0_i32_1 = arith.constant 0 : i32
    return %c0_i32, %c0_i32_0 : i32, i32
  }
  func.func @transform_7(%arg0: i32) -> (i32, i32) {
    %c0_i32 = arith.constant 0 : i32
    %c0_i32_0 = arith.constant 0 : i32
    %c0_i32_1 = arith.constant 0 : i32
    return %c0_i32, %c0_i32_0 : i32, i32
  }
  func.func @transform_8(%arg0: i32) -> (i32, i32, i32) {
    %c0_i32 = arith.constant 0 : i32
    %c0_i32_0 = arith.constant 0 : i32
    %c0_i32_1 = arith.constant 0 : i32
    return %arg0, %c0_i32, %c0_i32_0 : i32, i32, i32
  }
}

</mosaic_0001>

<bundles_post_ra>
// kernel: tpu_custom_call.1
= control target key start
LH: loop header
LB: loop body
LE: loop exit
PB: predicated region body
PF: predicated region fallthrough
CT: control target
= control target key end

     0   :  { %13 = vsyncpa [#allocation3], 0  ;;  %s2244_s0 = inlined_call_operand.vmem [shape: f32[2,4,256], index: 0, kind: input, shape index: {}]   ;;  %s2245_s1 = inlined_call_operand.vmem [shape: f32[9,1,256], index: 1, kind: input, shape index: {}]   ;;  %s2246_s2 = inlined_call_operand.vmem [shape: f32[9,8,4], index: 2, kind: input, shape index: {}]   ;;  %s2247_s3 = inlined_call_operand.vmem [shape: f32[8,1], index: 3, kind: input, shape index: {}]   ;;  %s2248_s4 = inlined_call_operand.vmem [shape: f32[8,1], index: 4, kind: input, shape index: {}]   ;;  %s2249_s5 = inlined_call_operand.vmem [shape: f32[9,8,8], index: 5, kind: input, shape index: {}]   ;;  %s2250_s6 = inlined_call_operand.vmem [shape: f32[8,1], index: 6, kind: input, shape index: {}]   ;;  %s2251_s7 = inlined_call_operand.vmem [shape: f32[8,1], index: 7, kind: input, shape index: {}]   ;;  %s2252_s8 = inlined_call_operand.hbm [shape: f32[2,8,256], index: 8, kind: output, shape index: {}]  }
   0x1   :  { %15 = vsyncpa [#allocation3 + $0x1], 0  ;;  %s1807_s27 = smov 0   ;;  %s1809_s28 = smov 0  }
   0x2   :  { %s1811_s29 = smov 0   ;;  %s1813_s30 = smov 0  }
   0x3 LB: > { %s1828_s9 = sadd.s32 4294967295, %s1751_s30   ;;  %s1547_s10 = sadd.s32 4294967294, %s1751_s30   ;;  %s1751_s30 = sphi %s1813_s30, %s2267_s30   ;;  %s1747_s29 = sphi %s1811_s29, %s2266_s29   ;;  %s1743_s28 = sphi %s1809_s28, %s2265_s28   ;;  %s1739_s27 = sphi %s1807_s27, %s2264_s27  }
   0x4   : > { %s1832_s11 = sadd.s32 1, %s1751_s30   ;;  %s201_s12 = sadd.s32 1, %s1747_s29 }
   0x5   : > { %s198_s13 = ssub.s32 %s1751_s30, %s1832_s11  ;;  %p211_p0 = scmp.ne.s32.totalorder %s1747_s29, %s1743_s28 }
   0x6   : > { %p199_p1 = scmp.eq.s32.totalorder %s198_s13, 0  ;;  %p212_p2 = scmp.eq.s32.totalorder %s1828_s9, 1 }
   0x7   : > { %p217_p3 = scmp.ne.s32.totalorder %s1743_s28, %s1739_s27  ;;  %p218_p4 = scmp.eq.s32.totalorder %s1547_s10, 1 }
   0x8   : > { %s1843_s14 = scalar_select %p199_p1, %s1747_s29, %s201_s12  }
   0x9   : > { %p1845_p5 = por %p212_p2, %p211_p0  ;;  %p1849_p6 = por %p218_p4, %p217_p3 }
   0xa   : > { %p1550_p7 = scmp.ge.s32.totalorder %s1751_s30, 1  ;;  %p265_p8 = scmp.lt.s32.totalorder %s1751_s30, 3 }
   0xc   : > { %p266_p9 = pnand %p1550_p7, %p265_p8 }
   0xd   : > { %p299_p10 = scmp.lt.s32.totalorder (!%p266_p9), %s1828_s9, 1  ;;  %s1753_s22 = smov (!%p266_p9), 17  }
   0xe   : > { %269 = sbr.rel (%p266_p9) target bundleno = 649 (0x289), region = 52  ;;  %s1754_s23 = smov (!%p266_p9), 16  }
   0xf   : > { %s1755_s24 = smov (!%p266_p9), 15   ;;  %s1756_s25 = smov (!%p266_p9), 1  }
  0x10   : > { %s2257_s26 = smov (!%p266_p9), 127   ;;  %s1758_s10 = smov (!%p266_p9), 113  }
  0x11   : > { %s2253_s12 = smov (!%p266_p9), 112   ;;  %s2255_s13 = smov (!%p266_p9), 111  }
  0x12   : > { %s2262_s19 = smov (!%p266_p9), 111  }
  0x13   : > { %s300_s17 = scalar_select %p299_p10, %s1828_s9, 1  ;;  %v315_v19 = vlaneseq  ;;  %v1885_v23 = vld [vmem:[%s2245_s1] sm:$0x3]  ;;  %vm356_vm1 = vcmask 1043456   ;;  %vm352_vm2 = vcmask 31744   ;;  %v1555_v46 = vld [vmem:[%s2246_s2 + $0x8] sm:$0xff] }
  0x14   : > { %v322_v24 = vperm.slane %v1885_v23, 0  ;;  %v323_v25 = vperm.slane %v1885_v23, 1  ;;  %v328_v31 = vld [vmem:[%s2246_s2] sm:$0xff]  ;;  %v1565_v59 = vld [vmem:[%s2246_s2 + $0x10] sm:$0xff]  ;;  %v1571_v60 = vld [vmem:[%s2246_s2 + $0x18] sm:$0xff]  ;;  %vm987_vm10 = vcmask 64512  }
  0x15   : > { %s1636_s18 = sshll.u32 %s300_s17, 3  ;;  %v1880_v21 = vand.u32 127, %v315_v19  ;;  %v1904_v33 = vld [vmem:[%s2245_s1 + $0x2] sm:$0x3]  ;;  %v1909_v34 = vld [vmem:[%s2245_s1 + $0x4] sm:$0x3] }
  0x16   : > { %s303_s21 = scalar_lea.vmem %s2244_s0, %s1636_s18  ;;  %v344_v36 = vperm.slane %v1904_v33, 0  ;;  %v345_v37 = vperm.slane %v1904_v33, 1  ;;  %v467_v38 = vperm.slane %v1909_v34, 0  ;;  %v468_v39 = vperm.slane %v1909_v34, 1  ;;  %v1943_v50 = vld [vmem:[%s2245_s1 + $0x6] sm:$0x3] }
  0x17   : > { %v304_v0 = vld [vmem:[%s303_s21] sm:$0xff]  ;;  %vm317_vm0 = vcmp.lt.s32.totalorder %v1880_v21, 17  ;;  %vm461_vm3 = vcmp.lt.s32.totalorder %v1880_v21, 15  ;;  %vm338_vm4 = vcmp.lt.s32.totalorder %v1880_v21, 16  ;;  %vm535_vm5 = vcmp.lt.s32.totalorder %v1880_v21, 1  ;;  %s296_s18 = sand.u32 1, %s1743_s28  }
  0x18   : > { %306 = vst [vmem:[#allocation1] ss:$2 sm:$0xff] %v304_v0  ;;  %v541_v51 = vperm.slane %v1943_v50, 0  ;;  %v542_v52 = vperm.slane %v1943_v50, 1  ;;  %v1576_v61 = vld [vmem:[%s2246_s2 + $0x20] sm:$0xff]  ;;  %vm663_vm6 = vcmp.lt.s32.totalorder %v1880_v21, 127 }
  0x19   : > { %v1984_v62 = vld [vmem:[%s2245_s1 + $0xa] sm:$0x3]  ;;  %vm737_vm7 = vcmp.lt.s32.totalorder %v1880_v21, 113  ;;  %vm811_vm8 = vcmp.lt.s32.totalorder %v1880_v21, 112  ;;  %vm885_vm9 = vcmp.lt.s32.totalorder %v1880_v21, 111  ;;  %v976_v23 = vld [vmem:[%s2249_s5] sm:$0xff] }
  0x1f   : > { %v307_v1 = vld.sshfl [vmem:[#allocation1] sm:$0xff pattern:$0x75316420]  ;;  %v308_v2 = vld.sshfl [vmem:[#allocation1 + $0x8] sm:$0xff pattern:$0x75316420] }
  0x20   : > { %311 = vrot.lane.b32.xlu0 %v307_v1, %s1753_s22  ;;  %329 = vst [vmem:[#allocation1] ss:$2 sm:$0xff] %v304_v0  ;;  %v958_v1 = vld [vmem:[%s2248_s4] sm:$0xff] }
  0x27   : > { %v330_v3 = vld.sshfl [vmem:[#allocation1] sm:$0xff pattern:$0x75316420]  ;;  %v331_v4 = vld.sshfl [vmem:[#allocation1 + $0x8] sm:$0xff pattern:$0x75316420] }
  0x28   : > { %334 = vrot.lane.b32.xlu1 %v330_v3, %s1754_s23  ;;  %313 = vrot.lane.b32.xlu0 %v308_v2, %s1753_s22  ;;  %452 = vst [vmem:[#allocation1] ss:$2 sm:$0xff] %v304_v0  ;;  %v669_v2 = vperm.slane %v1984_v62, 0  ;;  %v670_v3 = vperm.slane %v1984_v62, 1  ;;  %v1619_v62 = vld [vmem:[%s2249_s5 + $0x28] sm:$0xff] }
  0x2f   : > { %v453_v5 = vld.sshfl [vmem:[#allocation1] sm:$0xff pattern:$0x75316420]  ;;  %v454_v6 = vld.sshfl [vmem:[#allocation1 + $0x8] sm:$0xff pattern:$0x75316420] }
  0x30   : > { %336 = vrot.lane.b32.xlu1 %v331_v4, %s1754_s23  ;;  %526 = vst [vmem:[#allocation1] ss:$2 sm:$0xff] %v304_v0  ;;  %457 = vrot.lane.b32.xlu2 %v453_v5, %s1755_s24  ;;  %v1761_v4 = vmov 0  }
  0x31   : > { %1686 = vset.pattern.permute.xlu1 %v1761_v4  ;;  %1687 = vset.pattern.permute.xlu2 %v1761_v4 }
  0x32   : > { %1688 = vset.pattern.permute.xlu0 %v1761_v4 }
  0x37   : > { %v528_v7 = vld.sshfl [vmem:[#allocation1 + $0x8] sm:$0xff pattern:$0x75316420]  ;;  %v527_v8 = vld.sshfl [vmem:[#allocation1] sm:$0xff pattern:$0x75316420] }
  0x38   : > { %533 = vrot.lane.b32.xlu1 %v528_v7, %s1756_s25  ;;  %531 = vrot.lane.b32.xlu0 %v527_v8, %s1756_s25  ;;  %602 = vst [vmem:[#allocation1] ss:$2 sm:$0xff] %v304_v0 }
  0x39   : > { %459 = vrot.lane.b32.xlu2 %v454_v6, %s1755_s24 }
  0x3f   : > { %v1868_v9 = vld.sshfl [vmem:[#allocation1] sm:$0xff pattern:$0x75316420]  ;;  %v1870_v10 = vld.sshfl [vmem:[#allocation1 + $0x8] sm:$0xff pattern:$0x75316420] }
  0x40   : > { %654 = vst [vmem:[#allocation1] ss:$2 sm:$0xff] %v304_v0 }
  0x47   : > { %v656_v11 = vld.sshfl [vmem:[#allocation1 + $0x8] sm:$0xff pattern:$0x75316420]  ;;  %v655_v12 = vld.sshfl [vmem:[#allocation1] sm:$0xff pattern:$0x75316420] }
  0x48   : > { %661 = vrot.lane.b32.xlu0 %v656_v11, %s2257_s26  ;;  %728 = vst [vmem:[#allocation1] ss:$2 sm:$0xff] %v304_v0  ;;  %659 = vrot.lane.b32.xlu2 %v655_v12, %s2257_s26  ;;  %v2011_v11 = vld [vmem:[%s2245_s1 + $0xc] sm:$0x3] }
  0x4f   : > { %v729_v13 = vld.sshfl [vmem:[#allocation1] sm:$0xff pattern:$0x75316420]  ;;  %v730_v14 = vld.sshfl [vmem:[#allocation1 + $0x8] sm:$0xff pattern:$0x75316420] }
  0x50   : > { %733 = vrot.lane.b32.xlu1 %v729_v13, %s1758_s10  ;;  %802 = vst [vmem:[#allocation1] ss:$2 sm:$0xff] %v304_v0  ;;  %735 = vrot.lane.b32.xlu2 %v730_v14, %s1758_s10  ;;  %v743_v13 = vperm.slane %v2011_v11, 0  ;;  %v744_v14 = vperm.slane %v2011_v11, 1 }
  0x57   : > { %v804_v15 = vld.sshfl [vmem:[#allocation1 + $0x8] sm:$0xff pattern:$0x75316420]  ;;  %v803_v16 = vld.sshfl [vmem:[#allocation1] sm:$0xff pattern:$0x75316420] }
  0x58   : > { %809 = vrot.lane.b32.xlu1 %v804_v15, %s2253_s12  ;;  %807 = vrot.lane.b32.xlu0 %v803_v16, %s2253_s12  ;;  %876 = vst [vmem:[#allocation1] ss:$2 sm:$0xff] %v304_v0  ;;  %v950_v0 = vld [vmem:[%s2247_s3] sm:$0xff]  ;;  %s2261_s12 = smov 127  }
  0x5f   : > { %v878_v17 = vld.sshfl [vmem:[#allocation1 + $0x8] sm:$0xff pattern:$0x75316420]  ;;  %v877_v18 = vld.sshfl [vmem:[#allocation1] sm:$0xff pattern:$0x75316420] }
  0x60   : > { %883 = vrot.lane.b32.xlu0 %v878_v17, %s2255_s13  ;;  %881 = vrot.lane.b32.xlu2 %v877_v18, %s2255_s13 }
  0x61   : > { %953 = vperm.xlu1 %1686, %v950_v0  }
  0x68   : > { %961 = vperm.xlu2 %1687, %v958_v1  }
  0x8a   : > { %v458_v22 = vpop.permute.xlu2 %457 }
  0x92   : > { %v312_v20 = vpop.permute.xlu0 %311 }
  0x93   : > { %v460_v35 = vpop.permute.xlu2 %459 }
  0x94   : > { %v462_v40 = vsel %vm461_vm3, %v458_v22, %v460_v35  ;;  %v463_v41 = vsel %vm461_vm3, %v460_v35, %v458_v22  ;;  %v2034_v22 = vld [vmem:[%s2245_s1 + $0xe] sm:$0x3] }
  0x95   : > { %v471_v48 = vmul.f32 %v467_v38, %v463_v41  ;;  %v472_v49 = vmul.f32 %v468_v39, %v462_v40  ;;  %v1594_v40 = vld [vmem:[%s2246_s2 + $0x38] sm:$0xff]  ;;  %v2057_v41 = vld [vmem:[%s2245_s1 + $0x10] sm:$0x3] }
  0x9a   : > { %v335_v26 = vpop.permute.xlu1 %334  ;;  %v314_v27 = vpop.permute.xlu0 %313 }
  0x9b   : > { %v318_v28 = vsel %vm317_vm0, %v312_v20, %v314_v27  ;;  %v319_v29 = vsel %vm317_vm0, %v314_v27, %v312_v20  ;;  %v1588_v20 = vld [vmem:[%s2246_s2 + $0x30] sm:$0xff]  ;;  %v818_v27 = vperm.slane %v2034_v22, 1 }
  0x9c   : > { %v326_v30 = vmul.f32 %v322_v24, %v319_v29  ;;  %v327_v32 = vmul.f32 %v323_v25, %v318_v28 }
  0x9e   : > { %1560 = vmatpush.msk.msra.mxu2 %vm356_vm1, %v326_v30  ;;  %1562 = vmatpush.msk.msra.mxu3 %vm356_vm1, %v327_v32 }
  0x9f   : > { %1561 = vmatmul.msk.f32.vlgmr.msra.gmra.mxu2 %vm352_vm2, %v328_v31  ;;  %1563 = vmatmul.msk.f32.vlgmr.msra.gmra.mxu3 %vm352_vm2, %v328_v31 }
  0xa2   : > { %v337_v42 = vpop.permute.xlu1 %336  ;;  %v660_v63 = vpop.permute.xlu2 %659 }
  0xa3   : > { %v339_v43 = vsel %vm338_vm4, %v335_v26, %v337_v42  ;;  %v340_v44 = vsel %vm338_vm4, %v337_v42, %v335_v26  ;;  %v817_v26 = vperm.slane %v2034_v22, 0  ;;  %v891_v42 = vperm.slane %v2057_v41, 0 }
  0xa4   : > { %v348_v45 = vmul.f32 %v344_v36, %v340_v44  ;;  %v349_v47 = vmul.f32 %v345_v37, %v339_v43  ;;  %v892_v43 = vperm.slane %v2057_v41, 1 }
  0xa6   : > { %1556 = vmatpush.msk.msra.mxu0 %vm356_vm1, %v348_v45  ;;  %1558 = vmatpush.msk.msra.mxu1 %vm356_vm1, %v349_v47 }
  0xa7   : > { %1557 = vmatmul.msk.f32.vlgmr.msra.gmra.mxu0 %vm352_vm2, %v1555_v46  ;;  %1559 = vmatmul.msk.f32.vlgmr.msra.gmra.mxu1 %vm352_vm2, %v1555_v46 }
  0xa8   : > { %1566 = vmatpush.msk.msrb.mxu0 %vm356_vm1, %v471_v48  ;;  %1568 = vmatpush.msk.msrb.mxu1 %vm356_vm1, %v472_v49 }
  0xaa   : > { %1577 = vmatpush.msk.msra.mxu0 %vm356_vm1, %v1868_v9  ;;  %1579 = vmatpush.msk.msra.mxu1 %vm356_vm1, %v1870_v10  ;;  %v534_v53 = vpop.permute.xlu1 %533  ;;  %v532_v54 = vpop.permute.xlu0 %531  ;;  %v1582_v10 = vld [vmem:[%s2246_s2 + $0x28] sm:$0xff] }
  0xab   : > { %v536_v55 = vsel %vm535_vm5, %v532_v54, %v534_v53  ;;  %v537_v56 = vsel %vm535_vm5, %v534_v53, %v532_v54  ;;  %v736_v12 = vpop.permute.xlu2 %735  ;;  %v1600_v53 = vld [vmem:[%s2246_s2 + $0x40] sm:$0xff] }
  0xac   : > { %v545_v57 = vmul.f32 %v541_v51, %v537_v56  ;;  %v546_v58 = vmul.f32 %v542_v52, %v536_v55 }
  0xae   : > { %1572 = vmatpush.msk.msrb.mxu2 %vm356_vm1, %v545_v57  ;;  %1574 = vmatpush.msk.msrb.mxu3 %vm356_vm1, %v546_v58 }
  0xaf   : > { %1567 = vmatmul.msk.f32.vlgmr.msrb.gmra.mxu0 %vm352_vm2, %v1565_v59  ;;  %1573 = vmatmul.msk.f32.vlgmr.msrb.gmra.mxu2 %vm352_vm2, %v1571_v60 }
  0xb0   : > { %1569 = vmatmul.msk.f32.vlgmr.msrb.gmra.mxu1 %vm352_vm2, %v1565_v59  ;;  %1575 = vmatmul.msk.f32.vlgmr.msrb.gmra.mxu3 %vm352_vm2, %v1571_v60 }
  0xb7   : > { %1578 = vmatmul.msk.f32.vlgmr.msra.gmra.mxu0 %vm352_vm2, %v1576_v61 }
  0xb8   : > { %1580 = vmatmul.msk.f32.vlgmr.msra.gmra.mxu1 %vm352_vm2, %v1576_v61 }
  0xba   : > { %v662_v5 = vpop.permute.xlu0 %661  ;;  %v882_v44 = vpop.permute.xlu2 %881 }
  0xbb   : > { %v664_v6 = vsel %vm663_vm6, %v660_v63, %v662_v5  ;;  %v665_v7 = vsel %vm663_vm6, %v662_v5, %v660_v63 }
  0xbc   : > { %v673_v8 = vmul.f32 %v669_v2, %v664_v6  ;;  %v674_v9 = vmul.f32 %v670_v3, %v665_v7 }
  0xbe   : > { %1583 = vmatpush.msk.msra.mxu2 %vm356_vm1, %v673_v8  ;;  %1585 = vmatpush.msk.msra.mxu3 %vm356_vm1, %v674_v9 }
  0xbf   : > { %1584 = vmatmul.msk.f32.vlgmr.msra.gmra.mxu2 %vm352_vm2, %v1582_v10  ;;  %1586 = vmatmul.msk.f32.vlgmr.msra.gmra.mxu3 %vm352_vm2, %v1582_v10 }
  0xc2   : > { %v734_v15 = vpop.permute.xlu1 %733 }
  0xc3   : > { %v738_v16 = vsel %vm737_vm7, %v734_v15, %v736_v12  ;;  %v739_v17 = vsel %vm737_vm7, %v736_v12, %v734_v15 }
  0xc4   : > { %v747_v18 = vmul.f32 %v743_v13, %v738_v16  ;;  %v748_v19 = vmul.f32 %v744_v14, %v739_v17 }
  0xc6   : > { %1589 = vmatpush.msk.msrb.mxu0 %vm356_vm1, %v747_v18  ;;  %1591 = vmatpush.msk.msrb.mxu1 %vm356_vm1, %v748_v19 }
  0xc7   : > { %1590 = vmatmul.msk.f32.vlgmr.msrb.gmra.mxu0 %vm352_vm2, %v1588_v20  ;;  %1592 = vmatmul.msk.f32.vlgmr.msrb.gmra.mxu1 %vm352_vm2, %v1588_v20 }
  0xca   : > { %v810_v28 = vpop.permute.xlu1 %809  ;;  %v808_v29 = vpop.permute.xlu0 %807 }
  0xcb   : > { %v812_v30 = vsel %vm811_vm8, %v808_v29, %v810_v28  ;;  %v813_v31 = vsel %vm811_vm8, %v810_v28, %v808_v29 }
  0xcc   : > { %v821_v32 = vmul.f32 %v817_v26, %v812_v30  ;;  %v822_v35 = vmul.f32 %v818_v27, %v813_v31 }
  0xce   : > { %1595 = vmatpush.msk.msrb.mxu2 %vm356_vm1, %v821_v32  ;;  %1597 = vmatpush.msk.msrb.mxu3 %vm356_vm1, %v822_v35 }
  0xcf   : > { %1596 = vmatmul.msk.f32.vlgmr.msrb.gmra.mxu2 %vm352_vm2, %v1594_v40  ;;  %1598 = vmatmul.msk.f32.vlgmr.msrb.gmra.mxu3 %vm352_vm2, %v1594_v40 }
  0xd2   : > { %v884_v45 = vpop.permute.xlu0 %883 }
  0xd3   : > { %v886_v46 = vsel %vm885_vm9, %v882_v44, %v884_v45  ;;  %v887_v47 = vsel %vm885_vm9, %v884_v45, %v882_v44  ;;  %v954_v35 = vpop.permute.xlu1 %953 }
  0xd4   : > { %v895_v48 = vmul.f32 %v891_v42, %v886_v46  ;;  %v896_v49 = vmul.f32 %v892_v43, %v887_v47  ;;  %v962_v47 = vpop.permute.xlu2 %961 }
  0xd6   : > { %1601 = vmatpush.msk.msra.mxu0 %vm356_vm1, %v895_v48  ;;  %1603 = vmatpush.msk.msra.mxu1 %vm356_vm1, %v896_v49 }
  0xd7   : > { %1602 = vmatmul.msk.f32.vlgmr.msra.gmra.mxu0 %vm352_vm2, %v1600_v53  ;;  %1604 = vmatmul.msk.f32.vlgmr.msra.gmra.mxu1 %vm352_vm2, %v1600_v53 }
 0x122   : > { %v449_v56 = vpop.f32.mrf.mxu3  ;;  %v429_v57 = vpop.f32.mrf.mxu2 }
 0x124   : > { %v400_v54 = vpop.f32.mrf.mxu1  ;;  %v380_v55 = vpop.f32.mrf.mxu0 }
 0x125   : > { %v430_v60 = vadd.f32 %v429_v57, %v380_v55  ;;  %v450_v61 = vadd.f32 %v449_v56, %v400_v54  ;;  %v1451_v57 = vld [vmem:[%s2250_s6] sm:$0xff] }
 0x12c   : > { %v501_v59 = vpop.f32.mrf.mxu0 }
 0x12d   : > { %v521_v58 = vpop.f32.mrf.mxu1  ;;  %v524_v4 = vadd.f32 %v501_v59, %v430_v60 }
 0x12e   : > { %v525_v5 = vadd.f32 %v521_v58, %v450_v61  ;;  %v1459_v58 = vld [vmem:[%s2251_s7] sm:$0xff] }
 0x132   : > { %v575_v0 = vpop.f32.mrf.mxu2 }
 0x133   : > { %v595_v63 = vpop.f32.mrf.mxu3  ;;  %v598_v7 = vadd.f32 %v575_v0, %v524_v4 }
 0x134   : > { %v629_v6 = vpop.f32.mrf.mxu0  ;;  %v599_v8 = vadd.f32 %v595_v63, %v525_v5  ;;  %v1605_v5 = vld [vmem:[%s2249_s5 + $0x8] sm:$0xff] }
 0x135   : > { %v649_v1 = vpop.f32.mrf.mxu1  ;;  %v652_v12 = vadd.f32 %v629_v6, %v598_v7 }
 0x136   : > { %v653_v15 = vadd.f32 %v649_v1, %v599_v8 }
 0x142   : > { %v703_v9 = vpop.f32.mrf.mxu2  ;;  %v723_v10 = vpop.f32.mrf.mxu3 }
 0x143   : > { %v726_v18 = vadd.f32 %v703_v9, %v652_v12  ;;  %v727_v19 = vadd.f32 %v723_v10, %v653_v15 }
 0x144   : > { %v777_v16 = vpop.f32.mrf.mxu0  ;;  %v797_v17 = vpop.f32.mrf.mxu1 }
 0x145   : > { %v800_v20 = vadd.f32 %v777_v16, %v726_v18  ;;  %v801_v28 = vadd.f32 %v797_v17, %v727_v19  ;;  %v1610_v17 = vld [vmem:[%s2249_s5 + $0x10] sm:$0xff] }
 0x152   : > { %v851_v29 = vpop.f32.mrf.mxu2  ;;  %v871_v30 = vpop.f32.mrf.mxu3 }
 0x153   : > { %v874_v31 = vadd.f32 %v851_v29, %v800_v20  ;;  %v875_v32 = vadd.f32 %v871_v30, %v801_v28  ;;  %v1616_v20 = vld [vmem:[%s2249_s5 + $0x20] sm:$0xff]  ;;  %v1613_v28 = vld [vmem:[%s2249_s5 + $0x18] sm:$0xff] }
 0x154   : > { %v925_v40 = vpop.f32.mrf.mxu0  ;;  %v945_v44 = vpop.f32.mrf.mxu1 }
 0x155   : > { %v948_v45 = vadd.f32 %v925_v40, %v874_v31  ;;  %v949_v46 = vadd.f32 %v945_v44, %v875_v32 }
 0x157   : > { %v956_v48 = vmul.f32 %v954_v35, %v948_v45  ;;  %v957_v49 = vmul.f32 %v954_v35, %v949_v46  ;;  %v1622_v46 = vld [vmem:[%s2249_s5 + $0x30] sm:$0xff] }
 0x159   : > { %v964_v53 = vadd.f32 %v962_v47, %v956_v48  ;;  %v965_v54 = vadd.f32 %v962_v47, %v957_v49  ;;  %v1628_v48 = vld [vmem:[%s2249_s5 + $0x40] sm:$0xff] }
 0x15b   : > { %v966_v55 = vmax.f32 %v964_v53, 0.0  ;;  %v967_v56 = vmax.f32 %v965_v54, 0.0 }
 0x15d   : > { %979 = vrot.lane.b32.xlu1 %v967_v56, %s1754_s23  ;;  %1074 = vrot.lane.b32.xlu2 %v966_v55, %s1755_s24 }
 0x15e   : > { %977 = vrot.lane.b32.xlu0 %v966_v55, %s1754_s23  ;;  %s2263_s23 = smov 112  }
 0x165   : > { %968 = vrot.lane.b32.xlu1 %v966_v55, %s1753_s22  ;;  %970 = vrot.lane.b32.xlu2 %v967_v56, %s1753_s22 }
 0x166   : > { %1076 = vrot.lane.b32.xlu0 %v967_v56, %s1755_s24 }
 0x16d   : > { %1131 = vrot.lane.b32.xlu1 %v967_v56, %s1756_s25  ;;  %1286 = vrot.lane.b32.xlu2 %v966_v55, %s1758_s10 }
 0x16e   : > { %1129 = vrot.lane.b32.xlu0 %v966_v55, %s1756_s25 }
 0x175   : > { %1231 = vrot.lane.b32.xlu1 %v966_v55, %s2261_s12  ;;  %1233 = vrot.lane.b32.xlu2 %v967_v56, %s2261_s12  ;;  %s1551_s12 = sshll.u32 %s296_s18, 4 }
 0x176   : > { %1288 = vrot.lane.b32.xlu0 %v967_v56, %s1758_s10  ;;  %s298_s26 = scalar_lea.vmem [#allocation2], %s1551_s12  ;;  %s1709_s12 = scalar_lea.hbm %s2252_s8, 32 }
 0x177   : > { %s1485_s13 = sshll.u32 %s298_s26, 4  ;;  %s1486_s13 = int_to_ptr.vmem [resolvable:$true] %s1485_s13 }
 0x17d   : > { %1398 = vrot.lane.b32.xlu1 %v967_v56, %s2262_s19  ;;  %1341 = vrot.lane.b32.xlu2 %v966_v55, %s2263_s23 }
 0x17e   : > { %1396 = vrot.lane.b32.xlu0 %v966_v55, %s2262_s19  ;;  %s1637_s19 = sshll.u32 %s1828_s9, 4  ;;  %s1472_s9 = scalar_lea.sflag [#allocation3], %s296_s18 }
 0x17f   : > { %s1483_s24 = scalar_lea.hbm %s2252_s8, %s1637_s19 }
 0x180   : > { %s1487_s25 = sshll.u32 %s1483_s24, 4  ;;  %s1488_s25 = int_to_ptr.hbm [resolvable:$true] %s1487_s25 }
 0x181   : > { %s1703_s10 = sshra.s32 %s1488_s25, 4  ;;  %s1704_s10 = int_to_ptr.hbm [resolvable:$true] %s1703_s10 }
 0x182   : > { %s1705_s20 = scalar_lea.hbm %s1704_s10, 16  ;;  %p1710_p0 = scmp.lt.s32.totalorder %s1704_s10, %s2252_s8 }
 0x183   : > { %p1706_p11 = scmp.ne.s32.totalorder %s1704_s10, %s1705_s20  ;;  %p1711_p1 = scmp.lt.s32.totalorder %s1709_s12, %s1705_s20 }
 0x185   : > { %1454 = vperm.xlu1 %1686, %v1451_v57   ;;  %1462 = vperm.xlu2 %1687, %v1459_v58   ;;  %p1707_p12 = pnand %p1706_p11, %p1845_p5  ;;  %p1712_p2 = por %p1711_p1, %p1710_p0 }
 0x186   : > { %1343 = vrot.lane.b32.xlu0 %v967_v56, %s2263_s23 }
 0x187   : > { %p1708_p13 = pneg %p1707_p12 }
 0x189   : > { %p1713_p3 = pnand %p1712_p2, %p1708_p13 }
 0x1b7   : > { %v1075_v59 = vpop.permute.xlu2 %1074 }
 0x1bf   : > { %v971_v6 = vpop.permute.xlu2 %970 }
 0x1cf   : > { %v980_v60 = vpop.permute.xlu1 %979 }
 0x1d0   : > { %v978_v61 = vpop.permute.xlu0 %977 }
 0x1d1   : > { %v981_v63 = vsel %vm338_vm4, %v978_v61, %v980_v60  ;;  %v982_v0 = vsel %vm338_vm4, %v980_v60, %v978_v61 }
 0x1d2   : > { %v983_v1 = vmul.f32 %v982_v0, %v344_v36  ;;  %v984_v4 = vmul.f32 %v981_v63, %v345_v37 }
 0x1d4   : > { %1006 = vmatpush.msra.mxu2 %v983_v1  ;;  %1026 = vmatpush.msra.mxu3 %v984_v4 }
 0x1d5   : > { %1606 = vmatmul.msk.f32.vlgmr.msra.gmra.mxu2 %vm987_vm10, %v1605_v5  ;;  %1607 = vmatmul.msk.f32.vlgmr.msra.gmra.mxu3 %vm987_vm10, %v1605_v5 }
 0x1d7   : > { %v969_v7 = vpop.permute.xlu1 %968 }
 0x1d8   : > { %v972_v8 = vsel %vm317_vm0, %v969_v7, %v971_v6  ;;  %v973_v33 = vsel %vm317_vm0, %v971_v6, %v969_v7  ;;  %v1077_v36 = vpop.permute.xlu0 %1076 }
 0x1d9   : > { %v974_v37 = vmul.f32 %v973_v33, %v322_v24  ;;  %v975_v9 = vmul.f32 %v972_v8, %v323_v25  ;;  %v1078_v10 = vsel %vm461_vm3, %v1075_v59, %v1077_v36  ;;  %v1079_v12 = vsel %vm461_vm3, %v1077_v36, %v1075_v59  ;;  %v1287_v24 = vpop.permute.xlu2 %1286 }
 0x1da   : > { %v1080_v15 = vmul.f32 %v1079_v12, %v467_v38  ;;  %v1081_v16 = vmul.f32 %v1078_v10, %v468_v39 }
 0x1db   : > { %1049 = vmatpush.msrb.mxu0 %v974_v37  ;;  %1069 = vmatpush.msrb.mxu1 %v975_v9 }
 0x1dc   : > { %1102 = vmatpush.msrb.mxu2 %v1080_v15  ;;  %1122 = vmatpush.msrb.mxu3 %v1081_v16 }
 0x1dd   : > { %1611 = vmatmul.msk.f32.vlgmr.msrb.gmra.mxu2 %vm987_vm10, %v1610_v17  ;;  %1612 = vmatmul.msk.f32.vlgmr.msrb.gmra.mxu3 %vm987_vm10, %v1610_v17 }
 0x1de   : > { %1204 = vmatpush.msra.mxu2 %v966_v55  ;;  %1224 = vmatpush.msra.mxu3 %v967_v56  ;;  %v1625_v55 = vld [vmem:[%s2249_s5 + $0x38] sm:$0xff] }
 0x1df   : > { %1608 = vmatmul.msk.f32.vlgmr.msrb.gmra.mxu0 %vm987_vm10, %v976_v23  ;;  %1609 = vmatmul.msk.f32.vlgmr.msrb.gmra.mxu1 %vm987_vm10, %v976_v23  ;;  %v1132_v25 = vpop.permute.xlu1 %1131 }
 0x1e0   : > { %v1130_v34 = vpop.permute.xlu0 %1129 }
 0x1e1   : > { %v1133_v38 = vsel %vm535_vm5, %v1130_v34, %v1132_v25  ;;  %v1134_v39 = vsel %vm535_vm5, %v1132_v25, %v1130_v34  ;;  %v1234_v29 = vpop.permute.xlu2 %1233 }
 0x1e2   : > { %v1135_v18 = vmul.f32 %v1134_v39, %v541_v51  ;;  %v1136_v19 = vmul.f32 %v1133_v38, %v542_v52 }
 0x1e4   : > { %1157 = vmatpush.msra.mxu0 %v1135_v18  ;;  %1177 = vmatpush.msra.mxu1 %v1136_v19 }
 0x1e5   : > { %1617 = vmatmul.msk.f32.vlgmr.msra.gmra.mxu2 %vm987_vm10, %v1616_v20  ;;  %1618 = vmatmul.msk.f32.vlgmr.msra.gmra.mxu3 %vm987_vm10, %v1616_v20 }
 0x1e7   : > { %1614 = vmatmul.msk.f32.vlgmr.msra.gmra.mxu0 %vm987_vm10, %v1613_v28  ;;  %1615 = vmatmul.msk.f32.vlgmr.msra.gmra.mxu1 %vm987_vm10, %v1613_v28  ;;  %v1232_v50 = vpop.permute.xlu1 %1231 }
 0x1e8   : > { %v1235_v51 = vsel %vm663_vm6, %v1232_v50, %v1234_v29  ;;  %v1236_v52 = vsel %vm663_vm6, %v1234_v29, %v1232_v50  ;;  %v1289_v30 = vpop.permute.xlu0 %1288 }
 0x1e9   : > { %v1237_v31 = vmul.f32 %v1235_v51, %v669_v2  ;;  %v1238_v32 = vmul.f32 %v1236_v52, %v670_v3  ;;  %v1290_v35 = vsel %vm737_vm7, %v1287_v24, %v1289_v30  ;;  %v1291_v40 = vsel %vm737_vm7, %v1289_v30, %v1287_v24  ;;  %v1342_v49 = vpop.permute.xlu2 %1341 }
 0x1ea   : > { %v1292_v44 = vmul.f32 %v1290_v35, %v743_v13  ;;  %v1293_v45 = vmul.f32 %v1291_v40, %v744_v14 }
 0x1eb   : > { %1259 = vmatpush.msrb.mxu0 %v1237_v31  ;;  %1279 = vmatpush.msrb.mxu1 %v1238_v32 }
 0x1ec   : > { %1314 = vmatpush.msrb.mxu2 %v1292_v44  ;;  %1334 = vmatpush.msrb.mxu3 %v1293_v45 }
 0x1ed   : > { %1623 = vmatmul.msk.f32.vlgmr.msrb.gmra.mxu2 %vm987_vm10, %v1622_v46  ;;  %1624 = vmatmul.msk.f32.vlgmr.msrb.gmra.mxu3 %vm987_vm10, %v1622_v46 }
 0x1ef   : > { %1620 = vmatmul.msk.f32.vlgmr.msrb.gmra.mxu0 %vm987_vm10, %v1619_v62  ;;  %1621 = vmatmul.msk.f32.vlgmr.msrb.gmra.mxu1 %vm987_vm10, %v1619_v62  ;;  %v1399_v2 = vpop.permute.xlu1 %1398 }
 0x1f0   : > { %v1397_v3 = vpop.permute.xlu0 %1396 }
 0x1f1   : > { %v1400_v11 = vsel %vm885_vm9, %v1397_v3, %v1399_v2  ;;  %v1401_v13 = vsel %vm885_vm9, %v1399_v2, %v1397_v3  ;;  %v1463_v29 = vpop.permute.xlu2 %1462 }
 0x1f2   : > { %v1402_v14 = vmul.f32 %v1400_v11, %v891_v42  ;;  %v1403_v47 = vmul.f32 %v1401_v13, %v892_v43 }
 0x1f4   : > { %1424 = vmatpush.msra.mxu2 %v1402_v14  ;;  %1444 = vmatpush.msra.mxu3 %v1403_v47 }
 0x1f5   : > { %1629 = vmatmul.msk.f32.vlgmr.msra.gmra.mxu2 %vm987_vm10, %v1628_v48  ;;  %1630 = vmatmul.msk.f32.vlgmr.msra.gmra.mxu3 %vm987_vm10, %v1628_v48 }
 0x1f7   : > { %v1455_v19 = vpop.permute.xlu1 %1454 }
 0x1f8   : > { %v1344_v53 = vpop.permute.xlu0 %1343 }
 0x1f9   : > { %v1345_v54 = vsel %vm811_vm8, %v1342_v49, %v1344_v53  ;;  %v1346_v42 = vsel %vm811_vm8, %v1344_v53, %v1342_v49 }
 0x1fa   : > { %v1347_v41 = vmul.f32 %v1345_v54, %v817_v26  ;;  %v1348_v43 = vmul.f32 %v1346_v42, %v818_v27 }
 0x1fc   : > { %1369 = vmatpush.msra.mxu0 %v1347_v41  ;;  %1389 = vmatpush.msra.mxu1 %v1348_v43 }
 0x1fd   : > { %1626 = vmatmul.msk.f32.vlgmr.msra.gmra.mxu0 %vm987_vm10, %v1625_v55  ;;  %1627 = vmatmul.msk.f32.vlgmr.msra.gmra.mxu1 %vm987_vm10, %v1625_v55 }
 0x258   : > { %v1008_v56 = vpop.f32.mrf.mxu2  ;;  %v1028_v57 = vpop.f32.mrf.mxu3 }
 0x25c   : > { %v1051_v21 = vpop.f32.mrf.mxu0  ;;  %v1071_v58 = vpop.f32.mrf.mxu1 }
 0x25d   : > { %v1052_v63 = vadd.f32 %v1051_v21, %v1008_v56  ;;  %v1072_v0 = vadd.f32 %v1071_v58, %v1028_v57 }
 0x260   : > { %v1104_v59 = vpop.f32.mrf.mxu2  ;;  %v1124_v60 = vpop.f32.mrf.mxu3 }
 0x261   : > { %v1127_v1 = vadd.f32 %v1104_v59, %v1052_v63  ;;  %v1128_v4 = vadd.f32 %v1124_v60, %v1072_v0 }
 0x264   : > { %v1159_v26 = vpop.f32.mrf.mxu0  ;;  %v1179_v61 = vpop.f32.mrf.mxu1 }
 0x265   : > { %v1182_v5 = vadd.f32 %v1159_v26, %v1127_v1  ;;  %v1183_v6 = vadd.f32 %v1179_v61, %v1128_v4 }
 0x268   : > { %v1206_v22 = vpop.f32.mrf.mxu2  ;;  %v1226_v27 = vpop.f32.mrf.mxu3 }
 0x269   : > { %v1229_v37 = vadd.f32 %v1206_v22, %v1182_v5  ;;  %v1230_v9 = vadd.f32 %v1226_v27, %v1183_v6 }
 0x26c   : > { %v1261_v33 = vpop.f32.mrf.mxu0  ;;  %v1281_v36 = vpop.f32.mrf.mxu1 }
 0x26d   : > { %v1284_v10 = vadd.f32 %v1261_v33, %v1229_v37  ;;  %v1285_v12 = vadd.f32 %v1281_v36, %v1230_v9 }
 0x270   : > { %v1316_v7 = vpop.f32.mrf.mxu2  ;;  %v1336_v8 = vpop.f32.mrf.mxu3 }
 0x271   : > { %v1339_v15 = vadd.f32 %v1316_v7, %v1284_v10  ;;  %v1340_v16 = vadd.f32 %v1336_v8, %v1285_v12 }
 0x278   : > { %v1426_v17 = vpop.f32.mrf.mxu2  ;;  %v1446_v23 = vpop.f32.mrf.mxu3 }
 0x27a   : > { %v1371_v24 = vpop.f32.mrf.mxu0  ;;  %v1391_v25 = vpop.f32.mrf.mxu1 }
 0x27b   : > { %v1394_v34 = vadd.f32 %v1371_v24, %v1339_v15  ;;  %v1395_v38 = vadd.f32 %v1391_v25, %v1340_v16 }
 0x27d   : > { %v1449_v39 = vadd.f32 %v1426_v17, %v1394_v34  ;;  %v1450_v18 = vadd.f32 %v1446_v23, %v1395_v38 }
 0x27f   : > { %v1457_v20 = vmul.f32 %v1455_v19, %v1449_v39  ;;  %v1458_v28 = vmul.f32 %v1455_v19, %v1450_v18 }
 0x281   : > { %v1465_v50 = vadd.f32 %v1463_v29, %v1457_v20  ;;  %v1466_v51 = vadd.f32 %v1463_v29, %v1458_v28 }
 0x283   : > { %v1467_v52 = vmax.f32 %v1465_v50, 0.0  ;;  %v1468_v30 = vmax.f32 %v1466_v51, 0.0 }
 0x285   : > { %1469 = vst [vmem:[%s298_s26] sm:$0xff] %v1467_v52 }
 0x286   : > { %1470 = vst [vmem:[%s298_s26 + $0x8] sm:$0xff] %v1468_v30 }
 0x287   : > { %1716 = shalt.err (!%p1713_p3)
}
 0x288   : > { %1638 = dma.vmem_to_hbm [thread:$0]  (%p1845_p5), %s1486_s13, 256, %s1488_s25, %s1472_s9  }
 0x289 PF: > { %p1644_p4 = scmp.ge.s32.totalorder %s1751_s30, 2  ;;  %s1499_s18 = sand.u32 1, %s1739_s27  }
 0x28a   : > { %s1500_s22 = scalar_lea.sflag [#allocation3], %s1499_s18 }
 0x28b   : > { %p1641_p7 = pnand %p1644_p4, %p1849_p6 }
 0x28d   : > { %p1642_p8 = pneg %p1641_p7 }
 0x28f   : > { %1734 = dma.done.wait (%p1642_p8), %s1500_s22, 256  }
 0x290   : > { %1736 = vsyncadd (%p1642_p8), %s1500_s22, 4294967040  ;;  %p18_p9 = scmp.ge.s32.totalorder %s1832_s11, 4   ;;  %s2264_s27 = smov %s1743_s28 }
 0x291   : > { %s2265_s28 = smov %s1747_s29  ;;  %s2266_s29 = smov %s1843_s14 }
 0x292   : > { %s2267_s30 = smov %s1832_s11  ;;  %20 = sbr.rel (!%p18_p9) target bundleno = 3 (0x3), region = 110 }
 0x297   :  { %1506 = vsyncpa [#allocation3], 1 }
 0x298   :  { %1508 = vsyncpa [#allocation3 + $0x1], 1 }

</bundles_post_ra>
